<compile_context>
chip_gen: v6e
topology: v6e:2x2x1
jax: 0.10.0
libtpu: 0.0.40
codegen_flags: <defaults>
</compile_context>

<pallas_src>
import jax
import jax.numpy as jnp
from jax.experimental import pallas as pl
from jax.experimental.pallas import tpu as pltpu


def _make_kernel(C, Lout, offsets):
    """Kernel factory closing over static shape constants."""
    n_taps = len(offsets)

    def kernel(xpf_ref, wk_ref, o_ref):
        # xpf_ref: (1, C, Lp)     bf16 -- padded image, channel-major, flat spatial
        # wk_ref : (C, 9*C + 1)   bf16 -- alpha-folded tap weights + bias column
        # o_ref  : (1, C, Lout)   f32  -- lane-dense output (wrap cols / tail = junk)
        x = xpf_ref[0]                                       # (C, Lp) bf16

        # Stage the 9 shifted lane windows exactly once (+ a ones row so the folded
        # bias rides the same contraction), then one fused MXU dot with f32 acc.
        rows = [x[:, off:off + Lout] for off in offsets]     # 9 x (C, Lout)
        rows.append(jnp.ones((1, Lout), dtype=x.dtype))      # bias row
        xk = jnp.concatenate(rows, axis=0)                   # (9C+1, Lout) bf16

        o_ref[0] = jnp.dot(wk_ref[...], xk,
                           preferred_element_type=jnp.float32)   # (C, Lout) f32

    del n_taps
    return kernel


def darts_expert_choice(x_nchw, alpha, w1, b1, w3, b3):
    """x_nchw: (B, C, H, W) f32; w1: (C,C); w3: (3,3,C,C). Returns (B, C, H, W) f32."""
    B, C, H, W = x_nchw.shape
    Hp, Wp = H + 2, W + 2
    L_valid = H * Wp                                   # valid output lanes (wrap domain)
    Lout = ((L_valid + 127) // 128) * 128              # lane-dense output width (384)
    offsets = tuple(ky * Wp + kx for ky in range(3) for kx in range(3))
    max_off = max(offsets)

    # Extra zero rows at the bottom so every shifted window x[:, off:off+Lout] stays
    # inside the single padded/flattened buffer (no OOB, no second pad pass).
    extra_rows = max(0, -(-(max_off + Lout - Hp * Wp) // Wp))
    Lp = (Hp + extra_rows) * Wp
    # Guard (review correctness note): all shifted-window reads must be in-bounds.
    assert max_off + Lout <= Lp, "shifted tap window would read past the padded buffer"

    # ---- alpha fold (f32, once) -> single flattened (C, 9C+1) bf16 weight ----
    a = jax.nn.softmax(alpha.astype(jnp.float32))
    eye = jnp.eye(C, dtype=jnp.float32)
    tap_mats = []
    for ky in range(3):
        for kx in range(3):
            m = a[2] * w3[ky, kx].astype(jnp.float32) + (a[3] / 9.0) * eye
            if ky == 1 and kx == 1:                     # center tap carries skip + 1x1 conv
                m = m + a[0] * eye + a[1] * w1.astype(jnp.float32)
            tap_mats.append(m.T)                        # (C_out, C_in) orientation
    bias = (a[1] * b1.astype(jnp.float32)
            + a[2] * b3.astype(jnp.float32)).reshape(C, 1)
    wk = jnp.concatenate([jnp.concatenate(tap_mats, axis=1), bias],
                         axis=1).astype(jnp.bfloat16)   # (C, 9C+1)

    # ---- single pad pass: zero-pad H (+extra rows), W; cast fuses into the pad ----
    xpf = jnp.pad(x_nchw.astype(jnp.bfloat16),
                  ((0, 0), (0, 0), (1, 1 + extra_rows), (1, 1))
                  ).reshape(B, C, Lp)                   # (B, C, Lp) bf16, one HBM pass

    kern = _make_kernel(C, Lout, offsets)
    out_flat = pl.pallas_call(
        kern,
        out_shape=jax.ShapeDtypeStruct((B, C, Lout), jnp.float32),
        grid_spec=pltpu.PrefetchScalarGridSpec(
            num_scalar_prefetch=0,
            grid=(B,),
            in_specs=[
                pl.BlockSpec((1, C, Lp), lambda b: (b, 0, 0)),       # padded flat image
                pl.BlockSpec((C, 9 * C + 1), lambda b: (0, 0)),      # folded weights+bias
            ],
            out_specs=pl.BlockSpec((1, C, Lout), lambda b: (b, 0, 0)),
        ),
        compiler_params=pltpu.CompilerParams(
            dimension_semantics=("parallel",),          # v7x: both TCs; v5e/v6e: serial
            vmem_limit_bytes=32 * 1024 * 1024),         # well under v7x 64 MiB physical
    )(xpf, wk)

    # Drop junk tail lanes and the 2 wrap columns per row; result is already NCHW.
    return out_flat[:, :, :L_valid].reshape(B, C, H, Wp)[:, :, :, :W]


def _reference(x_nchw, alpha, w1, b1, w3, b3):
    """Pure-JAX reference of the same mixed op (independent code path)."""
    B, C, H, W = x_nchw.shape
    xh = jnp.transpose(x_nchw, (0, 2, 3, 1)).astype(jnp.float32)
    wsm = jax.nn.softmax(alpha)
    op0 = xh
    op1 = jnp.einsum('bhwc,cd->bhwd', xh, w1) + b1
    xp = jnp.pad(xh, ((0, 0), (1, 1), (1, 1), (0, 0)))
    op2 = b3 + sum(
        jnp.einsum('bhwc,cd->bhwd', xp[:, ky:ky + H, kx:kx + W, :], w3[ky, kx])
        for ky in range(3) for kx in range(3))
    op3 = sum(xp[:, ky:ky + H, kx:kx + W, :]
              for ky in range(3) for kx in range(3)) / 9.0
    ref = wsm[0] * op0 + wsm[1] * op1 + wsm[2] * op2 + wsm[3] * op3
    return jnp.transpose(ref, (0, 3, 1, 2))


if __name__ == "__main__":
    key = jax.random.PRNGKey(0)
    kx_, ka, kw1, kb1, kw3, kb3 = jax.random.split(key, 6)

    B, C, H, W = 2, 4, 16, 16
    x = jax.random.normal(kx_, (B, C, H, W), jnp.float32)

    # Deterministic synthetic parameters (shapes implied by the candidate ops)
    alpha = 0.001 * jax.random.normal(ka, (4,), jnp.float32)      # nn.Parameter(randn(n)*0.001)
    w1 = 0.1 * jax.random.normal(kw1, (C, C), jnp.float32)        # 1x1 conv, (C_in, C_out)
    b1 = 0.1 * jax.random.normal(kb1, (C,), jnp.float32)
    w3 = 0.1 * jax.random.normal(kw3, (3, 3, C, C), jnp.float32)  # 3x3 conv, (ky,kx,Ci,Co)
    b3 = 0.1 * jax.random.normal(kb3, (C,), jnp.float32)

    out = darts_expert_choice(x, alpha, w1, b1, w3, b3)
    out = jax.block_until_ready(out)

    ref = _reference(x, alpha, w1, b1, w3, b3)
    assert out.shape == (B, C, H, W)
    assert jnp.allclose(out, ref, atol=2e-2, rtol=2e-2), "mismatch vs reference"

    print("KERNEL_OK")
</pallas_src>

<mosaic_0001>
module attributes {stable_mosaic.version = 11 : i64} {
  func.func @kernel(%arg0: i32, %arg1: memref<1x4x432xbf16, #tpu.memory_space<vmem>>, %arg2: memref<4x37xbf16, #tpu.memory_space<vmem>>, %arg3: memref<1x4x384xf32, #tpu.memory_space<vmem>>) attributes {dimension_semantics = [#tpu.dimension_semantics<parallel>], iteration_bounds = array<i64: 2>, scalar_prefetch = 0 : i64, scratch_operands = 0 : i64, tpu.core_type = #tpu.core_type<tc>, window_params = [{transform_indices = @transform_0, window_bounds = array<i64: 1, 4, 432>}, {pipeline_mode = #tpu.pipeline_mode<synchronous>, transform_indices = @transform_1, window_bounds = array<i64: 4, 37>}, {transform_indices = @transform_2, window_bounds = array<i64: 1, 4, 384>}]} {
    %c0 = arith.constant 0 : index
    %c0_0 = arith.constant 0 : index
    %c0_1 = arith.constant 0 : index
    %0 = vector.load %arg1[%c0, %c0_0, %c0_1] : memref<1x4x432xbf16, #tpu.memory_space<vmem>>, vector<1x4x432xbf16>
    %1 = vector.shape_cast %0 : vector<1x4x432xbf16> to vector<4x432xbf16>
    %2 = vector.extract_strided_slice %1 {offsets = [0, 0], sizes = [4, 384], strides = [1, 1]} : vector<4x432xbf16> to vector<4x384xbf16>
    %3 = vector.extract_strided_slice %1 {offsets = [0, 1], sizes = [4, 384], strides = [1, 1]} : vector<4x432xbf16> to vector<4x384xbf16>
    %4 = vector.extract_strided_slice %1 {offsets = [0, 2], sizes = [4, 384], strides = [1, 1]} : vector<4x432xbf16> to vector<4x384xbf16>
    %5 = vector.extract_strided_slice %1 {offsets = [0, 18], sizes = [4, 384], strides = [1, 1]} : vector<4x432xbf16> to vector<4x384xbf16>
    %6 = vector.extract_strided_slice %1 {offsets = [0, 19], sizes = [4, 384], strides = [1, 1]} : vector<4x432xbf16> to vector<4x384xbf16>
    %7 = vector.extract_strided_slice %1 {offsets = [0, 20], sizes = [4, 384], strides = [1, 1]} : vector<4x432xbf16> to vector<4x384xbf16>
    %8 = vector.extract_strided_slice %1 {offsets = [0, 36], sizes = [4, 384], strides = [1, 1]} : vector<4x432xbf16> to vector<4x384xbf16>
    %9 = vector.extract_strided_slice %1 {offsets = [0, 37], sizes = [4, 384], strides = [1, 1]} : vector<4x432xbf16> to vector<4x384xbf16>
    %10 = vector.extract_strided_slice %1 {offsets = [0, 38], sizes = [4, 384], strides = [1, 1]} : vector<4x432xbf16> to vector<4x384xbf16>
    %cst = arith.constant 1.000000e+00 : bf16
    %11 = vector.broadcast %cst : bf16 to vector<1x384xbf16>
    %12 = tpu.concatenate %2, %3, %4, %5, %6, %7, %8, %9, %10, %11 in 0 : vector<4x384xbf16>, vector<4x384xbf16>, vector<4x384xbf16>, vector<4x384xbf16>, vector<4x384xbf16>, vector<4x384xbf16>, vector<4x384xbf16>, vector<4x384xbf16>, vector<4x384xbf16>, vector<1x384xbf16> -> vector<37x384xbf16>
    %c0_2 = arith.constant 0 : index
    %c0_3 = arith.constant 0 : index
    %13 = vector.load %arg2[%c0_2, %c0_3] : memref<4x37xbf16, #tpu.memory_space<vmem>>, vector<4x37xbf16>
    %cst_4 = arith.constant dense<0.000000e+00> : vector<4x384xf32>
    %14 = tpu.matmul %13, %12, %cst_4 {dimension_numbers = #tpu.dot_dimension_numbers<[1], [0], [0], [1], [0, 0, 1, 1], [], []>} : vector<4x37xbf16>, vector<37x384xbf16>, vector<4x384xf32> -> vector<4x384xf32>
    %c0_5 = arith.constant 0 : index
    %c0_6 = arith.constant 0 : index
    %c0_7 = arith.constant 0 : index
    %15 = vector.load %arg3[%c0_5, %c0_6, %c0_7] : memref<1x4x384xf32, #tpu.memory_space<vmem>>, vector<1x4x384xf32>
    %16 = vector.shape_cast %15 : vector<1x4x384xf32> to vector<4x384xf32>
    %17 = vector.shape_cast %14 : vector<4x384xf32> to vector<1x4x384xf32>
    tpu.vector_store %arg3[%c0_5, %c0_6, %c0_7], %17 {strides = array<i32>} : memref<1x4x384xf32, #tpu.memory_space<vmem>>, vector<1x4x384xf32>,
    return
  }
  func.func @transform_0(%arg0: i32) -> (i32, i32, i32) {
    %c0_i32 = arith.constant 0 : i32
    %c0_i32_0 = arith.constant 0 : i32
    %c0_i32_1 = arith.constant 0 : i32
    return %arg0, %c0_i32, %c0_i32_0 : i32, i32, i32
  }
  func.func @transform_1(%arg0: i32) -> (i32, i32) {
    %c0_i32 = arith.constant 0 : i32
    %c0_i32_0 = arith.constant 0 : i32
    %c0_i32_1 = arith.constant 0 : i32
    return %c0_i32, %c0_i32_0 : i32, i32
  }
  func.func @transform_2(%arg0: i32) -> (i32, i32, i32) {
    %c0_i32 = arith.constant 0 : i32
    %c0_i32_0 = arith.constant 0 : i32
    %c0_i32_1 = arith.constant 0 : i32
    return %arg0, %c0_i32, %c0_i32_0 : i32, i32, i32
  }
}

</mosaic_0001>

<bundles_post_ra>
// kernel: tpu_custom_call.1
= control target key start
LH: loop header
LB: loop body
LE: loop exit
PB: predicated region body
PF: predicated region fallthrough
CT: control target
= control target key end

     0   :  { %7 = vsyncpa [#allocation3], 0  ;;  %s1071_s0 = inlined_call_operand.hbm [shape: bf16[2,4,432], index: 0, kind: input, shape index: {}]   ;;  %s1072_s1 = inlined_call_operand.hbm [shape: bf16[4,37], index: 1, kind: input, shape index: {}]   ;;  %s1073_s2 = inlined_call_operand.hbm [shape: f32[2,4,384], index: 2, kind: output, shape index: {}]  }
   0x1   :  { %9 = vsyncpa [#allocation3 + $0x1], 0 }
   0x2   :  { %10 = vsyncpa [#allocation6], 0 }
   0x3   :  { %11 = vsyncpa [#allocation4], 0 }
   0x4   :  { %13 = vsyncpa [#allocation4 + $0x1], 0  ;;  %s815_s9 = smov 0   ;;  %s817_s10 = smov 0  }
   0x5   :  { %s819_s11 = smov 0   ;;  %s821_s12 = smov 0  }
   0x6 LB: > { %s836_s13 = sadd.s32 4294967295, %s782_s12   ;;  %s556_s14 = sadd.s32 4294967294, %s782_s12   ;;  %s782_s12 = sphi %s821_s12, %s1096_s12   ;;  %s778_s11 = sphi %s819_s11, %s1095_s11   ;;  %s774_s10 = sphi %s817_s10, %s1094_s10   ;;  %s770_s9 = sphi %s815_s9, %s1093_s9  }
   0x7   : > { %p39_p0 = scmp.ne.s32.totalorder %s774_s10, %s770_s9  ;;  %p1074_p1 = scmp.eq.s32.totalorder %s836_s13, 0 }
   0x8   : > { %p90_p3 = scmp.eq.s32.totalorder %s556_s14, 1  ;;  %p557_p5 = scmp.ge.s32.totalorder %s782_s12, 1 }
   0x9   : > { %p845_p4 = por %p1074_p1, %p39_p0  ;;  %p97_p7 = scmp.lt.s32.totalorder %s782_s12, 3 }
   0xa   : > { %p850_p6 = por %p90_p3, %p39_p0  ;;  %s784_s18 = smov [#allocation5]  }
   0xb   : > { %s1078_s15 = scalar_select %p845_p4, 1, 0 }
   0xc   : > { %s1079_s16 = scalar_select %p850_p6, 1, 0 }
   0xd   : > { %p855_p8 = pnand %p557_p5, %p97_p7  ;;  %s110_s19 = sshll.u32 %s784_s18, 4  ;;  %s111_s19 = int_to_ptr.vmem [resolvable:$true] %s110_s19 }
   0xe   : > { %s863_s20 = sadd.s32 1, %s782_s12   ;;  %s26_s24 = sadd.s32 1, %s778_s11 }
   0xf   : > { %s1080_s17 = scalar_select %p855_p8, 1, 0 }
  0x10   : > { %p596_p10 = pneg %p855_p8  ;;  %s23_s22 = ssub.s32 %s782_s12, %s863_s20 }
  0x11   : > { %p873_p12 = scmp.eq.s32.totalorder %s23_s22, 0  ;;  %p33_p13 = scmp.ne.s32.totalorder %s778_s11, %s774_s10 }
  0x12   : > { %p867_p11 = pnand %p596_p10, %p1074_p1  ;;  %s671_s25 = scalar_lea.vmem %s111_s19, 32 }
  0x13   : > { %p672_p3 = scmp.ne.s32.totalorder %s111_s19, %s671_s25  ;;  %p679_p9 = scmp.lt.s32.totalorder %s111_s19, %s111_s19 }
  0x14   : > { %p662_p0 = pneg %p867_p11  ;;  %p680_p2 = scmp.lt.s32.totalorder %s671_s25, %s671_s25 }
  0x16   : > { %p674_p5 = pnand %p672_p3, %p662_p0  ;;  %p681_p10 = por %p680_p2, %p679_p9 }
  0x18   : > { %p675_p7 = pneg %p674_p5 }
  0x1a   : > { %p682_p1 = pnand %p681_p10, %p675_p7 }
  0x1c   : > { %685 = shalt.err (!%p682_p1)
}
  0x1d   : > { %599 = dma.hbm_to_vmem [thread:$0]  (!%p867_p11), %s1072_s1, 32, %s111_s19, [#allocation6]  }
  0x1e   : > { %s890_s28 = scalar_select %p873_p12, %s778_s11, %s26_s24  }
  0x1f   : > { %p34_p1 = scmp.eq.s32.totalorder %s782_s12, 0  ;;  %p1083_p2 = scmp.eq.s32.totalorder %s836_s13, 1 }
  0x20   : > { %p609_p0 = scmp.lt.s32.totalorder %s782_s12, 2  ;;  %s121_s30 = sand.u32 1, %s778_s11  }
  0x21   : > { %p898_p9 = por %p1083_p2, %p33_p13  ;;  %p35_p3 = por %p34_p1, %p33_p13 }
  0x22   : > { %s560_s3 = sshll.u32 %s121_s30, 3  ;;  %s571_s4 = sshll.u32 %s782_s12, 7 }
  0x23   : > { %s1084_s29 = scalar_select %p898_p9, 1, 0 }
  0x24   : > { %s911_s7 = scalar_lea.hbm %s1071_s0, %s571_s4  ;;  %s125_s8 = scalar_lea.vmem [#allocation2], %s560_s3 }
  0x25   : > { %s133_s14 = sshll.u32 %s125_s8, 4  ;;  %p913_p11 = pnand %p609_p0, %p35_p3  ;;  %s134_s14 = int_to_ptr.vmem [resolvable:$true] %s133_s14 }
  0x26   : > { %s122_s19 = scalar_lea.sflag [#allocation3], %s121_s30  ;;  %s686_s21 = scalar_lea.hbm %s911_s7, 128 }
  0x27   : > { %p687_p12 = scmp.ne.s32.totalorder %s911_s7, %s686_s21  ;;  %p688_p13 = pneg %p913_p11 }
  0x28   : > { %s691_s24 = scalar_lea.hbm %s1071_s0, 256  ;;  %p692_p10 = scmp.lt.s32.totalorder %s911_s7, %s1071_s0 }
  0x29   : > { %p689_p5 = pnand %p688_p13, %p687_p12  ;;  %p693_p1 = scmp.lt.s32.totalorder %s691_s24, %s686_s21 }
  0x2b   : > { %p690_p7 = pneg %p689_p5  ;;  %p694_p2 = por %p693_p1, %p692_p10 }
  0x2d   : > { %p695_p0 = pnand %p694_p2, %p690_p7 }
  0x2f   : > { %698 = shalt.err (!%p695_p0)
}
  0x30   : > { %s699_s27 = scalar_lea.vmem %s134_s14, 128  ;;  %s785_s30 = smov [#allocation2]  }
  0x31   : > { %p700_p3 = scmp.ne.s32.totalorder %s134_s14, %s699_s27  ;;  %s704_s3 = sshll.u32 %s785_s30, 4  ;;  %s705_s3 = int_to_ptr.vmem [resolvable:$false] %s704_s3 }
  0x32   : > { %s706_s4 = scalar_lea.vmem %s705_s3, 256  ;;  %p707_p12 = scmp.lt.s32.totalorder %s134_s14, %s705_s3 }
  0x33   : > { %p702_p6 = pnand %p700_p3, %p688_p13  ;;  %p708_p5 = scmp.lt.s32.totalorder %s706_s4, %s699_s27 }
  0x35   : > { %p703_p9 = pneg %p702_p6  ;;  %p709_p4 = por %p708_p5, %p707_p12 }
  0x37   : > { %p710_p8 = pnand %p709_p4, %p703_p9 }
  0x39   : > { %713 = shalt.err (!%p710_p8)
}
  0x3a   : > { %603 = dma.hbm_to_vmem [thread:$0]  (!%p913_p11), %s911_s7, 128, %s134_s14, %s122_s19  }
  0x3b   : > { %p1086_p7 = scmp.ne.s32.totalorder %s1080_s17, 0 }
  0x3c   : > { %s934_s5 = sand.u32 (!%p1086_p7), 1, %s774_s10   ;;  %p1087_p6 = scmp.ne.s32.totalorder (!%p1086_p7), %s1078_s15, 0 }
  0x3d   : > { %142 = sbr.rel (%p1086_p7) target bundleno = 472 (0x1d8), region = 28  ;;  %s564_s6 = sshll.u32 (!%p1086_p7), %s934_s5, 3 }
  0x3e   : > { %s145_s8 = scalar_lea.sflag (!%p1086_p7), [#allocation3], %s934_s5  ;;  %s148_s21 = scalar_lea.vmem (!%p1086_p7), [#allocation2], %s564_s6 }
  0x42   : > { %757 = dma.done.wait (%p1087_p6), %s145_s8, 128  }
  0x43   : > { %759 = vsyncadd (%p1087_p6), %s145_s8, 4294967168  ;;  %p1088_p4 = scmp.eq.s32.totalorder %s836_s13, 0 }
  0x45   : > { %761 = dma.done.wait (%p1088_p4), [#allocation6], 32   ;;  %p1089_p8 = pmov %p1088_p4 }
  0x46   : > { %v181_v0 = vlaneseq  ;;  %v786_v1 = vmov 1983009808   ;;  %v175_v6 = vld [vmem:[%s148_s21] sm:$0xff]  ;;  %s787_s17 = smov 90   ;;  %v788_v12 = vmov 0.0   ;;  %s789_s15 = smov 108  }
  0x47   : > { %763 = vsyncadd (%p1089_p8), [#allocation6], 4294967264  ;;  %v179_v2 = vunpack.c.l.s4 %v786_v1  ;;  %v177_v8 = vcombine.high %v175_v6, %v175_v6  ;;  %v193_v11 = vcombine.low %v175_v6, %v175_v6  ;;  %576 = vmatprep.subr.bf16.mxu1 %v788_v12  ;;  %s790_s7 = smov 109   ;;  %s791_s14 = smov 92   ;;  %vm795_vm0 = vmmov 0  }
  0x48   : > { %v182_v3 = vshrl.u32 %v181_v0, 7  ;;  %s792_s18 = smov 91   ;;  %s793_s19 = smov 127   ;;  %582 = vmatprep.mubr.msk.bf16.mxu1 %vm795_vm0, %v788_v12  ;;  %v796_v19 = vmov 0   ;;  %vm298_vm1 = vcmask 736256   ;;  %vm302_vm2 = vcmask 1041408  }
  0x49   : > { %v180_v4 = vunpack.c.0.s8 %v179_v2  ;;  %s794_s22 = smov 126   ;;  %406 = vmatprep.mubr.bf16.mxu0 %v796_v19  ;;  %s797_s23 = smov 110   ;;  %vm365_vm3 = vcmask 1042432   ;;  %v798_v24 = vmov 65535   ;;  %vm262_vm4 = vcmask 883712  }
  0x4a   : > { %v366_v25 = vsel %vm302_vm2, 4294967295, %v798_v24  ;;  %vm274_vm5 = vcmask 752640   ;;  %vm250_vm6 = vcmask 891904   ;;  %vm286_vm7 = vcmask 744448   ;;  %s586_s24 = smul.u32 12, %s934_s5  ;;  %p1090_p11 = scmp.ne.s32.totalorder %s1084_s29, 0 }
  0x4b   : > { %v183_v5 = vsub.s32 %v180_v4, %v182_v3  ;;  %v367_v28 = vsel %vm365_vm3, %v366_v25, 0  ;;  %vm312_vm8 = vcmask 1043456   ;;  %vm319_vm9 = vcmask 1045504   ;;  %s587_s27 = smul.u32 192, %s836_s13  ;;  %s462_s13 = scalar_lea.sflag [#allocation4], %s934_s5 }
  0x4c   : > { %vm210_vm10 = vcmask 1039360   ;;  %vm224_vm11 = vcmask 1031168   ;;  %vm237_vm12 = vcmask 900096   ;;  %vm361_vm13 = vcmask 302080   ;;  %s172_s25 = scalar_lea.vmem [#allocation7], %s586_s24  ;;  %s799_s8 = smov [#allocation7]  }
  0x4d   : > { %v946_v7 = vrot.slane %v175_v6, %v183_v5  ;;  %v954_v10 = vrot.slane %v177_v8, %v183_v5  ;;  %v200_v13 = vrot.slane %v193_v11, %v183_v5  ;;  %s476_s26 = sshll.u32 %s172_s25, 4  ;;  %s1030_s4 = scalar_lea.hbm %s1073_s2, %s587_s27  ;;  %s1025_s26 = int_to_ptr.vmem [resolvable:$true] %s476_s26 }
  0x4e   : > { %s714_s6 = scalar_lea.vmem %s1025_s26, 192  ;;  %s718_s21 = sshll.u32 %s799_s8, 4  ;;  %s719_s21 = int_to_ptr.vmem [resolvable:$false] %s718_s21 }
  0x4f   : > { %290 = vrot.lane.b32.xlu1 %v946_v7, %s787_s17  ;;  %v951_v9 = vcombine.high %v946_v7, %v946_v7  ;;  %v241_v14 = vcombine.high %v954_v10, %v954_v10  ;;  %v201_v15 = vcombine.high %v200_v13, %v200_v13  ;;  %v215_v16 = vcombine.low %v954_v10, %v954_v10  ;;  %p715_p9 = scmp.ne.s32.totalorder %s1025_s26, %s714_s6  ;;  %p721_p1 = scmp.lt.s32.totalorder %s1025_s26, %s719_s21 }
  0x50   : > { %v214_v17 = vcombine.low %v946_v7, %v946_v7  ;;  %v228_v18 = vcombine.low %v200_v13, %v200_v13 }
  0x51   : > { %292 = vrot.lane.b32.xlu0 %v951_v9, %s787_s17  ;;  %p716_p13 = pnand %p715_p9, %p1090_p11 }
  0x53   : > { %258 = vrot.lane.b32.xlu1 %v946_v7, %s789_s15  ;;  %p717_p10 = pneg %p716_p13 }
  0x55   : > { %294 = vrot.lane.b32.xlu0 %v954_v10, %s787_s17 }
  0x57   : > { %246 = vrot.lane.b32.xlu1 %v954_v10, %s790_s7 }
  0x59   : > { %244 = vrot.lane.b32.xlu0 %v951_v9, %s790_s7 }
  0x5b   : > { %296 = vrot.lane.b32.xlu1 %v241_v14, %s787_s17  ;;  %s720_s17 = scalar_lea.vmem %s719_s21, 384 }
  0x5c   : > { %p722_p2 = scmp.lt.s32.totalorder %s720_s17, %s714_s6 }
  0x5d   : > { %256 = vrot.lane.b32.xlu0 %v201_v15, %s789_s15 }
  0x5e   : > { %p723_p0 = por %p722_p2, %p721_p1 }
  0x5f   : > { %248 = vrot.lane.b32.xlu1 %v241_v14, %s790_s7 }
  0x60   : > { %p724_p3 = pnand %p723_p0, %p717_p10 }
  0x61   : > { %242 = vrot.lane.b32.xlu0 %v946_v7, %s790_s7 }
  0x63   : > { %260 = vrot.lane.b32.xlu1 %v951_v9, %s789_s15 }
  0x65   : > { %254 = vrot.lane.b32.xlu0 %v200_v13, %s789_s15 }
  0x67   : > { %270 = vrot.lane.b32.xlu1 %v215_v16, %s791_s14 }
  0x69   : > { %268 = vrot.lane.b32.xlu0 %v946_v7, %s791_s14 }
  0x6b   : > { %272 = vrot.lane.b32.xlu1 %v954_v10, %s791_s14 }
  0x6d   : > { %266 = vrot.lane.b32.xlu0 %v214_v17, %s791_s14 }
  0x6f   : > { %282 = vrot.lane.b32.xlu1 %v214_v17, %s792_s18 }
  0x71   : > { %280 = vrot.lane.b32.xlu0 %v200_v13, %s792_s18 }
  0x73   : > { %284 = vrot.lane.b32.xlu1 %v946_v7, %s792_s18 }
  0x75   : > { %278 = vrot.lane.b32.xlu0 %v228_v18, %s792_s18 }
  0x77   : > { %206 = vrot.lane.b32.xlu1 %v946_v7, %s793_s19 }
  0x79   : > { %204 = vrot.lane.b32.xlu0 %v201_v15, %s793_s19 }
  0x7b   : > { %208 = vrot.lane.b32.xlu1 %v951_v9, %s793_s19 }
  0x7d   : > { %202 = vrot.lane.b32.xlu0 %v200_v13, %s793_s19 }
  0x7f   : > { %220 = vrot.lane.b32.xlu1 %v215_v16, %s794_s22 }
  0x81   : > { %218 = vrot.lane.b32.xlu0 %v946_v7, %s794_s22 }
  0x83   : > { %222 = vrot.lane.b32.xlu1 %v954_v10, %s794_s22 }
  0x85   : > { %216 = vrot.lane.b32.xlu0 %v214_v17, %s794_s22 }
  0x87   : > { %233 = vrot.lane.b32.xlu1 %v214_v17, %s797_s23 }
  0x89   : > { %231 = vrot.lane.b32.xlu0 %v200_v13, %s797_s23 }
  0x8b   : > { %235 = vrot.lane.b32.xlu1 %v946_v7, %s797_s23 }
  0x8d   : > { %229 = vrot.lane.b32.xlu0 %v228_v18, %s797_s23 }
  0xc1   : > { %v291_v20 = vpop.permute.xlu1 %290 }
  0xc3   : > { %v293_v21 = vpop.permute.xlu0 %292 }
  0xc4   : > { %v299_v22 = vsel %vm298_vm1, %v291_v20, %v293_v21 }
  0xc5   : > { %v259_v23 = vpop.permute.xlu1 %258  ;;  %v355_v29 = vsel %vm302_vm2, %v299_v22, 1065369472 }
  0xc6   : > { %v368_v34 = vand.u32 %v367_v28, %v355_v29 }
  0xc7   : > { %v295_v26 = vpop.permute.xlu0 %294 }
  0xc8   : > { %v300_v27 = vsel %vm298_vm1, %v293_v21, %v295_v26 }
  0xc9   : > { %v247_v30 = vpop.permute.xlu1 %246  ;;  %v357_v31 = vsel %vm302_vm2, %v300_v27, 1065369472 }
  0xca   : > { %v370_v32 = vand.u32 %v367_v28, %v357_v31 }
  0xcb   : > { %v245_v33 = vpop.permute.xlu0 %244 }
  0xcc   : > { %384 = vmatprep.subr.bf16.mxu0 %v370_v32  ;;  %v252_v51 = vsel %vm250_vm6, %v245_v33, %v247_v30 }
  0xcd   : > { %385 = vmatpush1.bf16.msra.mxu0 %v368_v34  ;;  %v297_v35 = vpop.permute.xlu1 %296 }
  0xce   : > { %v301_v36 = vsel %vm298_vm1, %v295_v26, %v297_v35 }
  0xcf   : > { %v257_v37 = vpop.permute.xlu0 %256  ;;  %v359_v38 = vsel %vm302_vm2, %v301_v36, 1065369472 }
  0xd0   : > { %v372_v39 = vand.u32 %v367_v28, %v359_v38  ;;  %v264_v48 = vsel %vm262_vm4, %v257_v37, %v259_v23 }
  0xd1   : > { %v249_v40 = vpop.permute.xlu1 %248  ;;  %v334_v53 = vsel %vm302_vm2, %v252_v51, %v264_v48 }
  0xd2   : > { %577 = vmatpush3.bf16.msra.mxu1 %v372_v39  ;;  %v253_v56 = vsel %vm250_vm6, %v247_v30, %v249_v40  ;;  %v360_v39 = vld [vmem:[#allocation5] sm:$0x3] }
  0xd3   : > { %v243_v41 = vpop.permute.xlu0 %242  ;;  %578 = vmatprep.subr.bf16.mxu1 %v788_v12 }
  0xd4   : > { %v251_v0 = vsel %vm250_vm6, %v243_v41, %v245_v33 }
  0xd5   : > { %v261_v42 = vpop.permute.xlu1 %260 }
  0xd6   : > { %v265_v52 = vsel %vm262_vm4, %v259_v23, %v261_v42 }
  0xd7   : > { %v255_v43 = vpop.permute.xlu0 %254  ;;  %v337_v60 = vsel %vm302_vm2, %v253_v56, %v265_v52 }
  0xd8   : > { %v263_v57 = vsel %vm262_vm4, %v255_v43, %v257_v37 }
  0xd9   : > { %v271_v44 = vpop.permute.xlu1 %270  ;;  %v331_v3 = vsel %vm302_vm2, %v251_v0, %v263_v57 }
  0xdb   : > { %v269_v45 = vpop.permute.xlu0 %268 }
  0xdc   : > { %v276_v49 = vsel %vm274_vm5, %v269_v45, %v271_v44 }
  0xdd   : > { %v273_v46 = vpop.permute.xlu1 %272  ;;  %v341_v59 = vsel %vm312_vm8, %v334_v53, %v276_v49 }
  0xde   : > { %v277_v54 = vsel %vm274_vm5, %v271_v44, %v273_v46 }
  0xdf   : > { %v267_v47 = vpop.permute.xlu0 %266  ;;  %v343_v2 = vsel %vm312_vm8, %v337_v60, %v277_v54 }
  0xe0   : > { %v275_v61 = vsel %vm274_vm5, %v267_v47, %v269_v45 }
  0xe1   : > { %v283_v50 = vpop.permute.xlu1 %282  ;;  %v339_v8 = vsel %vm312_vm8, %v331_v3, %v275_v61 }
  0xe3   : > { %v281_v55 = vpop.permute.xlu0 %280 }
  0xe4   : > { %v288_v58 = vsel %vm286_vm7, %v281_v55, %v283_v50 }
  0xe5   : > { %v285_v62 = vpop.permute.xlu1 %284  ;;  %v348_v63 = vsel %vm319_vm9, %v341_v59, %v288_v58 }
  0xe6   : > { %v289_v1 = vsel %vm286_vm7, %v283_v50, %v285_v62  ;;  %386 = vmatprep.subr.bf16.mxu0 %v348_v63 }
  0xe7   : > { %v279_v4 = vpop.permute.xlu0 %278  ;;  %v351_v5 = vsel %vm319_vm9, %v343_v2, %v289_v1 }
  0xe8   : > { %v287_v6 = vsel %vm286_vm7, %v279_v4, %v281_v55  ;;  %579 = vmatpush3.bf16.msra.mxu1 %v351_v5 }
  0xe9   : > { %v207_v11 = vpop.permute.xlu1 %206  ;;  %v345_v13 = vsel %vm319_vm9, %v339_v8, %v287_v6  ;;  %580 = vmatprep.subr.bf16.mxu1 %v788_v12 }
  0xea   : > { %387 = vmatpush1.bf16.msra.mxu0 %v345_v13 }
  0xeb   : > { %v205_v14 = vpop.permute.xlu0 %204 }
  0xec   : > { %v212_v21 = vsel %vm210_vm10, %v205_v14, %v207_v11 }
  0xed   : > { %v209_v15 = vpop.permute.xlu1 %208  ;;  %v308_v25 = vsel %vm302_vm2, %v951_v9, %v212_v21 }
  0xee   : > { %v213_v24 = vsel %vm210_vm10, %v207_v11, %v209_v15 }
  0xef   : > { %v203_v16 = vpop.permute.xlu0 %202  ;;  %v311_v30 = vsel %vm302_vm2, %v954_v10, %v213_v24 }
  0xf0   : > { %v211_v27 = vsel %vm210_vm10, %v203_v16, %v205_v14 }
  0xf1   : > { %v221_v17 = vpop.permute.xlu1 %220  ;;  %v305_v35 = vsel %vm302_vm2, %v946_v7, %v211_v27 }
  0xf3   : > { %v219_v18 = vpop.permute.xlu0 %218 }
  0xf4   : > { %v226_v22 = vsel %vm224_vm11, %v219_v18, %v221_v17 }
  0xf5   : > { %v223_v19 = vpop.permute.xlu1 %222  ;;  %v316_v29 = vsel %vm312_vm8, %v308_v25, %v226_v22 }
  0xf6   : > { %v227_v26 = vsel %vm224_vm11, %v221_v17, %v223_v19 }
  0xf7   : > { %v217_v20 = vpop.permute.xlu0 %216  ;;  %v318_v9 = vsel %vm312_vm8, %v311_v30, %v227_v26 }
  0xf8   : > { %v225_v31 = vsel %vm224_vm11, %v217_v20, %v219_v18 }
  0xf9   : > { %v234_v23 = vpop.permute.xlu1 %233  ;;  %v314_v10 = vsel %vm312_vm8, %v305_v35, %v225_v31 }
  0xfb   : > { %v232_v12 = vpop.permute.xlu0 %231 }
  0xfc   : > { %v239_v28 = vsel %vm237_vm12, %v232_v12, %v234_v23 }
  0xfd   : > { %v236_v32 = vpop.permute.xlu1 %235  ;;  %v324_v33 = vsel %vm319_vm9, %v316_v29, %v239_v28 }
  0xfe   : > { %v240_v34 = vsel %vm237_vm12, %v234_v23, %v236_v32  ;;  %388 = vmatprep.subr.bf16.mxu0 %v324_v33 }
  0xff   : > { %v230_v36 = vpop.permute.xlu0 %229  ;;  %v327_v37 = vsel %vm319_vm9, %v318_v9, %v240_v34 }
 0x100   : > { %v238_v38 = vsel %vm237_vm12, %v230_v36, %v232_v12  ;;  %581 = vmatpush3.bf16.msra.mxu1 %v327_v37 }
 0x101   : > { %v321_v40 = vsel %vm319_vm9, %v314_v10, %v238_v38 }
 0x102   : > { %389 = vmatpush1.bf16.msra.mxu0 %v321_v40 }
 0x103   : > { %583 = vmatmul.mubr.msk.bf16.vlgmr.msra.gmra.mxu1 %vm361_vm13, %v360_v39 }
 0x105   : > { %566 = vmatmul.mubr.msk.bf16.vlgmr.msra.gmra.mxu0 %vm361_vm13, %v360_v39 }
 0x1c3   : > { %v449_v41 = vpop.f32.mrf.mxu1 }
 0x1c4   : > { %460 = vst [vmem:[%s172_s25 + $0x8] sm:$0xf] %v449_v41 }
 0x1c5   : > { %v408_v7 = vpop.f32.mrf.mxu0  ;;  %v584_v42 = vpop.f32.mrf.mxu1 }
 0x1c7   : > { %v410_v43 = vpop.f32.mrf.mxu0  ;;  %v452_v44 = vpop.f32.mrf.mxu1 }
 0x1c8   : > { %v457_v45 = vcombine.low %v408_v7, %v410_v43 }
 0x1c9   : > { %v412_v46 = vpop.f32.mrf.mxu0  ;;  %v585_v47 = vpop.f32.mrf.mxu1 }
 0x1ca   : > { %459 = vst [vmem:[%s172_s25] sm:$0xff] %v457_v45 }
 0x1cb   : > { %v413_v48 = vpop.f32.mrf.mxu0 }
 0x1cc   : > { %727 = shalt.err (!%p724_p3)
}
 0x1cd   : > { %s728_s15 = scalar_lea.hbm %s1030_s4, 192  ;;  %s732_s14 = scalar_lea.hbm %s1073_s2, 384 }
 0x1ce   : > { %p729_p12 = scmp.ne.s32.totalorder %s1030_s4, %s728_s15  ;;  %p733_p6 = scmp.lt.s32.totalorder %s1030_s4, %s1073_s2 }
 0x1cf   : > { %p734_p4 = scmp.lt.s32.totalorder %s732_s14, %s728_s15 }
 0x1d0   : > { %p730_p5 = pnand %p729_p12, %p1090_p11 }
 0x1d1   : > { %p735_p8 = por %p734_p4, %p733_p6 }
 0x1d2   : > { %p731_p7 = pneg %p730_p5 }
 0x1d4   : > { %p736_p9 = pnand %p735_p8, %p731_p7 }
 0x1d6   : > { %739 = shalt.err (!%p736_p9)
}
 0x1d7   : > { %594 = dma.vmem_to_hbm [thread:$0]  (%p1090_p11), %s1025_s26, 192, %s1030_s4, %s462_s13  }
 0x1d8 PF: > { %s488_s22 = sand.u32 1, %s770_s9   ;;  %p1091_p13 = scmp.ne.s32.totalorder %s1079_s16, 0 }
 0x1d9   : > { %p1092_p10 = scmp.ge.s32.totalorder %s782_s12, 2  ;;  %s489_s23 = scalar_lea.sflag [#allocation4], %s488_s22 }
 0x1db   : > { %p605_p1 = pnand %p1092_p10, %p1091_p13 }
 0x1dd   : > { %p606_p2 = pneg %p605_p1 }
 0x1df   : > { %765 = dma.done.wait (%p606_p2), %s489_s23, 192  }
 0x1e0   : > { %767 = vsyncadd (%p606_p2), %s489_s23, 4294967104  ;;  %p16_p0 = scmp.ge.s32.totalorder %s863_s20, 4   ;;  %s1093_s9 = smov %s774_s10 }
 0x1e1   : > { %s1094_s10 = smov %s778_s11  ;;  %s1095_s11 = smov %s890_s28 }
 0x1e2   : > { %s1096_s12 = smov %s863_s20  ;;  %18 = sbr.rel (!%p16_p0) target bundleno = 6 (0x6), region = 77 }
 0x1e7   :  { %494 = vsyncpa [#allocation3], 1 }
 0x1e8   :  { %496 = vsyncpa [#allocation3 + $0x1], 1 }
 0x1e9   :  { %497 = vsyncpa [#allocation6], 1 }
 0x1ea   :  { %498 = vsyncpa [#allocation4], 1 }
 0x1eb   :  { %500 = vsyncpa [#allocation4 + $0x1], 1 }

</bundles_post_ra>
